<compile_context>
chip_gen: v7x
topology: tpu7x:2x2x1
jax: 0.10.0
libtpu: 0.0.40
codegen_flags: <defaults>
</compile_context>

<pallas_src>
from functools import partial

import jax
import jax.numpy as jnp
from jax import lax
from jax.experimental import pallas as pl
from jax.experimental.pallas import tpu as pltpu


def _round_up(v, m):
    return ((v + m - 1) // m) * m


_STATIC_UNROLL_MAX = 4  # beyond this, batch rows are looped with lax.fori_loop


def _decomp_kernel(x_ref, sea_ref, mean_ref, xp_ref, *, weights, seq_len, max_pad, front):
    """x_ref:    (Bt, L, Dt) input tile.
       sea_ref:  (Bt, L, Dt) output tile (seasonal / residual part).
       mean_ref: (Bt, L, Dt) output tile (moving mean).
       xp_ref:   (2, ROWS, Dt) f32 VMEM scratch with the edge-replicated series;
                 the series center sits at sublane-aligned offset `front`."""
    L = seq_len
    Bt, _, Dt = x_ref.shape
    w0 = weights[0]

    def process_row(bb, slot):
        x = x_ref[bb].astype(jnp.float32)                       # (L, Dt) in vregs
        mean = x * w0                                           # FIR center tap
        if max_pad > 0:
            # Edge-replicated series into the f32 scratch (bulk store is aligned).
            xp_ref[slot, front:front + L, :] = x
            xp_ref[slot, front - max_pad:front, :] = jnp.broadcast_to(
                x[0:1, :], (max_pad, Dt))
            xp_ref[slot, front + L:front + L + max_pad, :] = jnp.broadcast_to(
                x[L - 1:L, :], (max_pad, Dt))
            for p in range(1, max_pad + 1):
                pair = (xp_ref[slot, front - p:front - p + L, :]
                        + xp_ref[slot, front + p:front + p + L, :])
                mean = mean + pair * weights[p]
        sea_ref[bb] = (x - mean).astype(sea_ref.dtype)
        mean_ref[bb] = mean.astype(mean_ref.dtype)

    if Bt <= _STATIC_UNROLL_MAX:
        # Static unroll; alternate scratch buffers to break the WAR dep across rows.
        for bb in range(Bt):
            process_row(bb, bb % 2)
    else:
        # Bounded live ranges for larger batch packings (v5e spill/vst pressure).
        def body(bb, carry):
            process_row(bb, 0)
            return carry
        lax.fori_loop(0, Bt, body, 0, unroll=2)


def series_decomp_multi(x, kernel_sizes, *, block_d=None, block_b=None):
    """x: (B, L, D).  Returns (sea, moving_mean), both (B, L, D)."""
    B, L, D = x.shape
    ks = tuple(sorted(int(k) for k in kernel_sizes))
    assert len(ks) >= 1
    # TODO(synk): even kernel sizes change the output length in the PyTorch module
    # (its sum() would fail); only odd kernels are supported, same as the reference.
    assert all(k >= 1 and k % 2 == 1 for k in ks), "only odd kernel sizes supported"

    n = len(ks)
    max_pad = max((k - 1) // 2 for k in ks)

    # FIR weights folded over kernels: mean[i] = w0*x[i] + sum_p w_p*(xc[i-p]+xc[i+p]).
    w = [0.0] * (max_pad + 1)
    for k in ks:
        for p in range((k - 1) // 2 + 1):
            w[p] += 1.0 / (float(k) * float(n))
    weights = tuple(w)

    front = _round_up(max_pad, 8)                    # aligned offset of series center
    rows = max(_round_up(front + L + max_pad, 8), 8)  # scratch rows

    # --- channel (lane) tiling: prefer full D (contiguous row DMA) ----------------
    if block_d is None:
        block_d = D
        if D % 128 == 0 and D > 1024:
            for cand in range(1024, 127, -128):       # largest mult-of-128 divisor
                if D % cand == 0:
                    block_d = cand
                    break
    assert D % block_d == 0
    nd = D // block_d

    # --- batch packing: amortize ~0.35 us/step; keep enough steps for pipelining --
    itemsize = jnp.dtype(x.dtype).itemsize
    per_row_step_bytes = 3 * L * block_d * itemsize   # 1 input + 2 output tiles
    if block_b is None:
        target_step_bytes = 6 << 20                   # ~6 MiB HBM traffic per step
        min_steps = min(4, B * nd)                    # megacore + double-buffering
        block_b = 1
        for cand in range(1, min(B, 8) + 1):
            if B % cand != 0:
                continue
            if (B // cand) * nd < min_steps:
                continue
            if cand * per_row_step_bytes <= target_step_bytes:
                block_b = cand
    assert B % block_b == 0

    # --- VMEM budget: double-buffered (1 in + 2 out) tiles + scratch + temps -------
    tile_bytes = block_b * L * block_d * itemsize
    scratch_bytes = 2 * rows * block_d * 4
    live_rows = min(block_b, _STATIC_UNROLL_MAX)      # fori path bounds live ranges
    interm_bytes = 6 * L * block_d * 4 * live_rows    # x, mean, pair temps, casts
    vmem_need = 2 * 3 * tile_bytes + scratch_bytes + interm_bytes
    try:
        phys_vmem = int(pltpu.get_tpu_info().vmem_capacity_bytes)
    except Exception:
        phys_vmem = 64 << 20
    vmem_cap = (phys_vmem * 3) // 4                   # 48 MiB v7x, 96 MiB v5e/v6e
    vmem_limit = int(min(vmem_cap, max(16 << 20, 2 * vmem_need)))

    kern = partial(_decomp_kernel, weights=weights, seq_len=L,
                   max_pad=max_pad, front=front)

    grid = (B // block_b, nd)
    blk = (block_b, L, block_d)
    idx = lambda b, d: (b, 0, d)

    sea, mean = pl.pallas_call(
        kern,
        out_shape=(jax.ShapeDtypeStruct((B, L, D), x.dtype),
                   jax.ShapeDtypeStruct((B, L, D), x.dtype)),
        grid_spec=pltpu.PrefetchScalarGridSpec(
            num_scalar_prefetch=0,
            grid=grid,
            in_specs=[pl.BlockSpec(blk, idx)],
            out_specs=(pl.BlockSpec(blk, idx), pl.BlockSpec(blk, idx)),
            scratch_shapes=[pltpu.VMEM((2, rows, block_d), jnp.float32)],
        ),
        compiler_params=pltpu.CompilerParams(
            dimension_semantics=("parallel", "parallel"),
            vmem_limit_bytes=vmem_limit),
    )(x)
    return sea, mean


def _reference(x, kernel_sizes):
    """Pure-JAX reference mirroring the PyTorch forward."""
    means = []
    for k in kernel_sizes:
        pad = (k - 1) // 2
        xp = jnp.pad(x, ((0, 0), (pad, pad), (0, 0)), mode="edge")
        windows = jnp.stack([xp[:, j:j + x.shape[1], :] for j in range(k)], axis=0)
        means.append(jnp.mean(windows, axis=0))
    mean = sum(means) / len(means)
    sea = sum(x - m for m in means) / len(means)
    return sea, mean


if __name__ == "__main__":
    key = jax.random.PRNGKey(0)
    B, L, D = 2, 32, 128                 # small, lane-dense demo shape
    kernel_sizes = [3, 5, 7]             # odd kernels, as in the PyTorch module

    x = jax.random.normal(key, (B, L, D), dtype=jnp.float32)

    sea, mean = series_decomp_multi(x, kernel_sizes)
    sea = jax.block_until_ready(sea)
    mean = jax.block_until_ready(mean)

    sea_ref, mean_ref = _reference(x, kernel_sizes)
    assert jnp.allclose(sea, sea_ref, atol=1e-5, rtol=1e-5), "sea mismatch"
    assert jnp.allclose(mean, mean_ref, atol=1e-5, rtol=1e-5), "mean mismatch"

    print("KERNEL_OK")
</pallas_src>

<mosaic_0001>
module attributes {stable_mosaic.version = 11 : i64} {
  func.func @_decomp_kernel(%arg0: i32, %arg1: i32, %arg2: memref<1x32x128xf32, #tpu.memory_space<vmem>>, %arg3: memref<1x32x128xf32, #tpu.memory_space<vmem>>, %arg4: memref<1x32x128xf32, #tpu.memory_space<vmem>>, %arg5: memref<2x48x128xf32, #tpu.memory_space<vmem>>) attributes {dimension_semantics = [#tpu.dimension_semantics<parallel>, #tpu.dimension_semantics<parallel>], iteration_bounds = array<i64: 2, 1>, scalar_prefetch = 0 : i64, scratch_operands = 1 : i64, tpu.core_type = #tpu.core_type<tc>, window_params = [{transform_indices = @transform_0, window_bounds = array<i64: 1, 32, 128>}, {transform_indices = @transform_1, window_bounds = array<i64: 1, 32, 128>}, {transform_indices = @transform_2, window_bounds = array<i64: 1, 32, 128>}]} {
    %c0 = arith.constant 0 : index
    %c0_0 = arith.constant 0 : index
    %c0_1 = arith.constant 0 : index
    %0 = vector.load %arg2[%c0, %c0_0, %c0_1] : memref<1x32x128xf32, #tpu.memory_space<vmem>>, vector<1x32x128xf32>
    %1 = vector.shape_cast %0 : vector<1x32x128xf32> to vector<32x128xf32>
    %cst = arith.constant 0.225396827 : f32
    %2 = vector.broadcast %cst : f32 to vector<32x128xf32>
    %3 = arith.mulf %1, %2 : vector<32x128xf32>
    %c0_2 = arith.constant 0 : index
    %c8 = arith.constant 8 : index
    %c0_3 = arith.constant 0 : index
    %4 = vector.load %arg5[%c0_2, %c8, %c0_3] : memref<2x48x128xf32, #tpu.memory_space<vmem>>, vector<1x32x128xf32>
    %5 = vector.shape_cast %4 : vector<1x32x128xf32> to vector<32x128xf32>
    %6 = vector.shape_cast %1 : vector<32x128xf32> to vector<1x32x128xf32>
    tpu.vector_store %arg5[%c0_2, %c8, %c0_3], %6 {strides = array<i32>} : memref<2x48x128xf32, #tpu.memory_space<vmem>>, vector<1x32x128xf32>,
    %7 = vector.extract_strided_slice %1 {offsets = [0, 0], sizes = [1, 128], strides = [1, 1]} : vector<32x128xf32> to vector<1x128xf32>
    %8 = vector.shape_cast %7 : vector<1x128xf32> to vector<1x128xf32>
    %9 = vector.broadcast %8 : vector<1x128xf32> to vector<3x128xf32>
    %c0_4 = arith.constant 0 : index
    %c5 = arith.constant 5 : index
    %c0_5 = arith.constant 0 : index
    %10 = vector.load %arg5[%c0_4, %c5, %c0_5] : memref<2x48x128xf32, #tpu.memory_space<vmem>>, vector<1x3x128xf32>
    %11 = vector.shape_cast %10 : vector<1x3x128xf32> to vector<3x128xf32>
    %12 = vector.shape_cast %9 : vector<3x128xf32> to vector<1x3x128xf32>
    tpu.vector_store %arg5[%c0_4, %c5, %c0_5], %12 {strides = array<i32>} : memref<2x48x128xf32, #tpu.memory_space<vmem>>, vector<1x3x128xf32>,
    %13 = vector.extract_strided_slice %1 {offsets = [31, 0], sizes = [1, 128], strides = [1, 1]} : vector<32x128xf32> to vector<1x128xf32>
    %14 = vector.shape_cast %13 : vector<1x128xf32> to vector<1x128xf32>
    %15 = vector.broadcast %14 : vector<1x128xf32> to vector<3x128xf32>
    %c0_6 = arith.constant 0 : index
    %c40 = arith.constant 40 : index
    %c0_7 = arith.constant 0 : index
    %16 = vector.load %arg5[%c0_6, %c40, %c0_7] : memref<2x48x128xf32, #tpu.memory_space<vmem>>, vector<1x3x128xf32>
    %17 = vector.shape_cast %16 : vector<1x3x128xf32> to vector<3x128xf32>
    %18 = vector.shape_cast %15 : vector<3x128xf32> to vector<1x3x128xf32>
    tpu.vector_store %arg5[%c0_6, %c40, %c0_7], %18 {strides = array<i32>} : memref<2x48x128xf32, #tpu.memory_space<vmem>>, vector<1x3x128xf32>,
    %c0_8 = arith.constant 0 : index
    %c7 = arith.constant 7 : index
    %c0_9 = arith.constant 0 : index
    %19 = vector.load %arg5[%c0_8, %c7, %c0_9] : memref<2x48x128xf32, #tpu.memory_space<vmem>>, vector<1x32x128xf32>
    %20 = vector.shape_cast %19 : vector<1x32x128xf32> to vector<32x128xf32>
    %c0_10 = arith.constant 0 : index
    %c9 = arith.constant 9 : index
    %c0_11 = arith.constant 0 : index
    %21 = vector.load %arg5[%c0_10, %c9, %c0_11] : memref<2x48x128xf32, #tpu.memory_space<vmem>>, vector<1x32x128xf32>
    %22 = vector.shape_cast %21 : vector<1x32x128xf32> to vector<32x128xf32>
    %23 = arith.addf %20, %22 : vector<32x128xf32>
    %cst_12 = arith.constant 0.225396827 : f32
    %24 = vector.broadcast %cst_12 : f32 to vector<32x128xf32>
    %25 = arith.mulf %23, %24 : vector<32x128xf32>
    %26 = arith.addf %3, %25 : vector<32x128xf32>
    %c0_13 = arith.constant 0 : index
    %c6 = arith.constant 6 : index
    %c0_14 = arith.constant 0 : index
    %27 = vector.load %arg5[%c0_13, %c6, %c0_14] : memref<2x48x128xf32, #tpu.memory_space<vmem>>, vector<1x32x128xf32>
    %28 = vector.shape_cast %27 : vector<1x32x128xf32> to vector<32x128xf32>
    %c0_15 = arith.constant 0 : index
    %c10 = arith.constant 10 : index
    %c0_16 = arith.constant 0 : index
    %29 = vector.load %arg5[%c0_15, %c10, %c0_16] : memref<2x48x128xf32, #tpu.memory_space<vmem>>, vector<1x32x128xf32>
    %30 = vector.shape_cast %29 : vector<1x32x128xf32> to vector<32x128xf32>
    %31 = arith.addf %28, %30 : vector<32x128xf32>
    %cst_17 = arith.constant 0.114285715 : f32
    %32 = vector.broadcast %cst_17 : f32 to vector<32x128xf32>
    %33 = arith.mulf %31, %32 : vector<32x128xf32>
    %34 = arith.addf %26, %33 : vector<32x128xf32>
    %c0_18 = arith.constant 0 : index
    %c5_19 = arith.constant 5 : index
    %c0_20 = arith.constant 0 : index
    %35 = vector.load %arg5[%c0_18, %c5_19, %c0_20] : memref<2x48x128xf32, #tpu.memory_space<vmem>>, vector<1x32x128xf32>
    %36 = vector.shape_cast %35 : vector<1x32x128xf32> to vector<32x128xf32>
    %c0_21 = arith.constant 0 : index
    %c11 = arith.constant 11 : index
    %c0_22 = arith.constant 0 : index
    %37 = vector.load %arg5[%c0_21, %c11, %c0_22] : memref<2x48x128xf32, #tpu.memory_space<vmem>>, vector<1x32x128xf32>
    %38 = vector.shape_cast %37 : vector<1x32x128xf32> to vector<32x128xf32>
    %39 = arith.addf %36, %38 : vector<32x128xf32>
    %cst_23 = arith.constant 0.0476190485 : f32
    %40 = vector.broadcast %cst_23 : f32 to vector<32x128xf32>
    %41 = arith.mulf %39, %40 : vector<32x128xf32>
    %42 = arith.addf %34, %41 : vector<32x128xf32>
    %43 = arith.subf %1, %42 : vector<32x128xf32>
    %c0_24 = arith.constant 0 : index
    %c0_25 = arith.constant 0 : index
    %c0_26 = arith.constant 0 : index
    %44 = vector.load %arg3[%c0_24, %c0_25, %c0_26] : memref<1x32x128xf32, #tpu.memory_space<vmem>>, vector<1x32x128xf32>
    %45 = vector.shape_cast %44 : vector<1x32x128xf32> to vector<32x128xf32>
    %46 = vector.shape_cast %43 : vector<32x128xf32> to vector<1x32x128xf32>
    tpu.vector_store %arg3[%c0_24, %c0_25, %c0_26], %46 {strides = array<i32>} : memref<1x32x128xf32, #tpu.memory_space<vmem>>, vector<1x32x128xf32>,
    %c0_27 = arith.constant 0 : index
    %c0_28 = arith.constant 0 : index
    %c0_29 = arith.constant 0 : index
    %47 = vector.load %arg4[%c0_27, %c0_28, %c0_29] : memref<1x32x128xf32, #tpu.memory_space<vmem>>, vector<1x32x128xf32>
    %48 = vector.shape_cast %47 : vector<1x32x128xf32> to vector<32x128xf32>
    %49 = vector.shape_cast %42 : vector<32x128xf32> to vector<1x32x128xf32>
    tpu.vector_store %arg4[%c0_27, %c0_28, %c0_29], %49 {strides = array<i32>} : memref<1x32x128xf32, #tpu.memory_space<vmem>>, vector<1x32x128xf32>,
    return
  }
  func.func @transform_0(%arg0: i32, %arg1: i32) -> (i32, i32, i32) {
    %c0_i32 = arith.constant 0 : i32
    %c0_i32_0 = arith.constant 0 : i32
    return %arg0, %c0_i32, %arg1 : i32, i32, i32
  }
  func.func @transform_1(%arg0: i32, %arg1: i32) -> (i32, i32, i32) {
    %c0_i32 = arith.constant 0 : i32
    %c0_i32_0 = arith.constant 0 : i32
    return %arg0, %c0_i32, %arg1 : i32, i32, i32
  }
  func.func @transform_2(%arg0: i32, %arg1: i32) -> (i32, i32, i32) {
    %c0_i32 = arith.constant 0 : i32
    %c0_i32_0 = arith.constant 0 : i32
    return %arg0, %c0_i32, %arg1 : i32, i32, i32
  }
}

</mosaic_0001>

<bundles_post_ra>
// kernel: tpu_custom_call.1
= control target key start
LH: loop header
LB: loop body
LE: loop exit
PB: predicated region body
PF: predicated region fallthrough
CT: control target
= control target key end

     0   :  { %8 = vsyncpa [#allocation4], 0  ;;  %s949_s0 = inlined_call_operand.hbm [shape: f32[2,32,128], index: 0, kind: input, shape index: {}]   ;;  %s950_s1 = inlined_call_operand.hbm [shape: f32[2,32,128], index: 1, kind: output, shape index: {0}]   ;;  %s951_s2 = inlined_call_operand.hbm [shape: f32[2,32,128], index: 2, kind: output, shape index: {1}]  }
   0x1   :  { %10 = vsyncpa [#allocation4 + $0x1], 0 }
   0x2   :  { %11 = vsyncpa [#allocation5], 0 }
   0x3   :  { %13 = vsyncpa [#allocation5 + $0x1], 0 }
   0x4   :  { %14 = vsyncpa [#allocation8], 0 }
   0x5   :  { %16 = vsyncpa [#allocation8 + $0x1], 0  ;;  %s703_s9 = smov 0   ;;  %s705_s10 = smov 0  }
   0x6   :  { %s707_s11 = smov 0   ;;  %s709_s12 = smov 0  }
   0x7   :  { %s711_s13 = smov 0   ;;  %s713_s14 = smov 0  }
   0x8 LB: > { %s442_s15 = sadd.s32 4294967295, %s679_s14   ;;  %s443_s16 = sadd.s32 4294967294, %s679_s14   ;;  %s679_s14 = sphi %s713_s14, %s22_s14   ;;  %s675_s13 = sphi %s711_s13, %s966_s13   ;;  %s671_s12 = sphi %s709_s12, %s965_s12   ;;  %s667_s11 = sphi %s707_s11, %s964_s11   ;;  %s663_s10 = sphi %s705_s10, %s963_s10   ;;  %s659_s9 = sphi %s703_s9, %s962_s9  }
   0x9   : > { %s34_s17 = sadd.s32 1, %s675_s13  ;;  %s43_s18 = sadd.s32 1, %s667_s11 }
   0xa   : > { %p36_p0 = scmp.ge.s32.totalorder %s34_s17, 2  ;;  %p50_p1 = scmp.ne.s32.totalorder %s667_s11, %s663_s10 }
   0xb   : > { %p51_p2 = scmp.eq.s32.totalorder %s679_s14, 0  ;;  %p56_p3 = scmp.ne.s32.totalorder %s663_s10, %s659_s9 }
   0xc   : > { %s968_s17 = smov (%p36_p0, %s34_s17), 0  ;;  %p57_p5 = scmp.eq.s32.totalorder %s442_s15, 0 }
   0xd   : > { %p744_p4 = por %p51_p2, %p50_p1  ;;  %s38_s20 = ssub.s32 %s675_s13, %s968_s17 }
   0xe   : > { %p82_p6 = scmp.eq.s32.totalorder %s442_s15, 1  ;;  %p41_p7 = scmp.eq.s32.totalorder %s38_s20, 0 }
   0xf   : > { %p750_p8 = por %p57_p5, %p56_p3  ;;  %p88_p10 = scmp.eq.s32.totalorder %s443_s16, 1 }
  0x10   : > { %p754_p9 = por %p82_p6, %p50_p1  ;;  %p481_p13 = scmp.lt.s32.totalorder %s679_s14, 2 }
  0x11   : > { %s759_s23 = scalar_select %p41_p7, %s667_s11, %s43_s18  }
  0x12   : > { %s955_s22 = scalar_select %p754_p9, 1, 0 }
  0x13   : > { %p761_p11 = por %p88_p10, %p56_p3  ;;  %s136_s25 = sand.u32 1, %s667_s11  }
  0x14   : > { %s446_s26 = sshll.u32 %s136_s25, 5  ;;  %s461_s27 = sshll.u32 %s675_s13, 9 }
  0x15   : > { %s956_s24 = scalar_select %p761_p11, 1, 0 }
  0x16   : > { %s772_s30 = scalar_lea.hbm %s949_s0, %s461_s27  ;;  %s140_s3 = scalar_lea.vmem [#allocation3], %s446_s26 }
  0x17   : > { %s148_s4 = sshll.u32 %s140_s3, 4  ;;  %p778_p0 = pnand %p481_p13, %p744_p4  ;;  %s774_s4 = int_to_ptr.vmem [resolvable:$true] %s148_s4 }
  0x18   : > { %s783_s6 = scalar_lea.sflag [#allocation4], %s136_s25  ;;  %s535_s7 = scalar_lea.hbm %s772_s30, 512 }
  0x19   : > { %p536_p2 = scmp.ne.s32.totalorder %s772_s30, %s535_s7  ;;  %p537_p3 = pneg %p778_p0 }
  0x1a   : > { %s540_s16 = scalar_lea.hbm %s949_s0, 1024  ;;  %p541_p4 = scmp.lt.u32.totalorder %s772_s30, %s949_s0 }
  0x1b   : > { %p538_p5 = pnand %p537_p3, %p536_p2  ;;  %p542_p7 = scmp.lt.u32.totalorder %s540_s16, %s535_s7 }
  0x1c   : > { %p544_p13 = scmp.lt.u32.totalorder %s535_s7, %s772_s30 }
  0x1d   : > { %p539_p6 = pneg %p538_p5  ;;  %p543_p10 = por %p542_p7, %p541_p4 }
  0x1f   : > { %p545_p12 = por %p544_p13, %p543_p10 }
  0x21   : > { %p546_p1 = pnand %p545_p12, %p539_p6 }
  0x23   : > { %549 = shalt.err (!%p546_p1)
}
  0x24   : > { %s550_s20 = scalar_lea.vmem %s774_s4, 512  ;;  %s681_s25 = smov [#allocation3]  }
  0x25   : > { %p551_p2 = scmp.ne.s32.totalorder %s774_s4, %s550_s20  ;;  %s555_s26 = sshll.u32 %s681_s25, 4  ;;  %s556_s26 = int_to_ptr.vmem [resolvable:$false] %s555_s26 }
  0x26   : > { %s557_s27 = scalar_lea.vmem %s556_s26, 1024  ;;  %p558_p9 = scmp.lt.s32.totalorder %s774_s4, %s556_s26 }
  0x27   : > { %p553_p5 = pnand %p551_p2, %p537_p3  ;;  %p559_p4 = scmp.lt.s32.totalorder %s557_s27, %s550_s20 }
  0x29   : > { %p554_p11 = pneg %p553_p5  ;;  %p560_p7 = por %p559_p4, %p558_p9 }
  0x2b   : > { %p561_p10 = pnand %p560_p7, %p554_p11 }
  0x2d   : > { %564 = shalt.err (!%p561_p10)
}
  0x2e   : > { %s682_s28 = smov 128   ;;  %s683_s29 = smov 8  }
  0x2f   : > { %473 = dma.hbm_to_vmem [thread:$0]  (!%p778_p0), %s772_s30, 512, %s774_s4, %s783_s6, %s682_s28, %s682_s28, %s683_s29  }
  0x30   : > { %p156_p12 = scmp.lt.s32.totalorder %s679_s14, 3  ;;  %p958_p1 = scmp.ge.s32.totalorder %s679_s14, 1 }
  0x32   : > { %p157_p3 = pnand %p958_p1, %p156_p12 }
  0x33   : > { %s815_s3 = sand.u32 (!%p157_p3), 1, %s663_s10  }
  0x34   : > { %160 = sbr.rel (%p157_p3) target bundleno = 127 (0x7f), region = 24  ;;  %s818_s7 = sshll.u32 (!%p157_p3), %s815_s3, 5 }
  0x35   : > { %s163_s8 = scalar_lea.sflag (!%p157_p3), [#allocation4], %s815_s3  ;;  %s166_s15 = scalar_lea.vmem (!%p157_p3), [#allocation3], %s818_s7 }
  0x3b   : > { %646 = dma.done.wait (%p750_p8), %s163_s8, 512  }
  0x3c   : > { %648 = vsyncadd (%p750_p8), %s163_s8, 4294966784  ;;  %v204_v0 = vlaneseq  ;;  %v826_v4 = vld [vmem:[%s166_s15] sm:$0xff]  ;;  %v828_v5 = vld [vmem:[%s166_s15 + $0x8] sm:$0xff]  ;;  %s191_s21 = scalar_lea.vmem [#allocation7], %s818_s7  ;;  %s847_s4 = scalar_lea.vmem [#allocation6], %s818_s7 }
  0x3d   : > { %v830_v6 = vld [vmem:[%s166_s15 + $0x10] sm:$0xff]  ;;  %200 = vst [vmem:[#allocation2 + $0x8] sm:$0xff] %v826_v4  ;;  %201 = vst [vmem:[#allocation2 + $0x10] sm:$0xff] %v828_v5  ;;  %v836_v8 = vld [vmem:[%s166_s15 + $0x18] sm:$0xff]  ;;  %v197_v13 = vmul.f32 0.22539683, %v828_v5 }
  0x3e   : > { %v205_v1 = vshrl.u32 %v204_v0, 7  ;;  %202 = vst [vmem:[#allocation2 + $0x18] sm:$0xff] %v830_v6  ;;  %203 = vst [vmem:[#allocation2 + $0x20] sm:$0xff] %v836_v8  ;;  %v198_v18 = vmul.f32 0.22539683, %v830_v6  ;;  %s323_s30 = sshll.u32 %s191_s21, 4  ;;  %s852_s30 = int_to_ptr.vmem [resolvable:$true] %s323_s30 }
  0x3f   : > { %v196_v29 = vmul.f32 0.22539683, %v826_v4  ;;  %v199_v53 = vmul.f32 0.22539683, %v836_v8  ;;  %s462_s5 = sshll.u32 %s671_s12, 9  ;;  %s306_s6 = sshll.u32 %s847_s4, 4  ;;  %s862_s6 = int_to_ptr.vmem [resolvable:$true] %s306_s6 }
  0x40   : > { %v206_v2 = vsub.s32 0, %v205_v1  ;;  %v211_v3 = vsub.s32 7, %v205_v1  ;;  %s860_s19 = scalar_lea.hbm %s951_s2, %s462_s5  ;;  %s869_s25 = scalar_lea.hbm %s950_s1, %s462_s5 }
  0x41   : > { %s292_s26 = scalar_lea.sflag [#allocation8], %s815_s3  ;;  %s565_s27 = scalar_lea.vmem %s852_s30, 512 }
  0x42   : > { %v207_v7 = vrot.slane %v826_v4, %v206_v2  ;;  %v212_v9 = vrot.slane %v836_v8, %v211_v3  ;;  %p566_p8 = scmp.ne.s32.totalorder %s852_s30, %s565_s27  ;;  %p959_p9 = scmp.ne.s32.totalorder %s955_s22, 0 }
  0x43   : > { %s684_s28 = smov [#allocation7]  }
  0x44   : > { %208 = vst [vmem:[#allocation2 + $0x5] sm:$0x7] %v207_v7  ;;  %213 = vst [vmem:[#allocation2 + $0x28] sm:$0x7] %v212_v9  ;;  %v215_v10 = vld [vmem:[#allocation2 + $0xf] sm:$0xff]  ;;  %p567_p11 = pnand %p566_p8, %p959_p9  ;;  %s569_s29 = sshll.u32 %s684_s28, 4  ;;  %s570_s29 = int_to_ptr.vmem [resolvable:$false] %s569_s29 }
  0x45   : > { %v219_v11 = vld [vmem:[#allocation2 + $0x11] sm:$0xff]  ;;  %v220_v22 = vld [vmem:[#allocation2 + $0x19] sm:$0xff]  ;;  %v218_v34 = vld [vmem:[#allocation2 + $0x9] sm:$0xff]  ;;  %s571_s7 = scalar_lea.vmem %s570_s29, 1024  ;;  %p572_p6 = scmp.lt.s32.totalorder %s852_s30, %s570_s29 }
  0x46   : > { %v235_v12 = vld [vmem:[#allocation2 + $0xe] sm:$0xff]  ;;  %v223_v14 = vadd.f32 %v219_v11, %v215_v10  ;;  %v216_v21 = vld [vmem:[#allocation2 + $0x17] sm:$0xff]  ;;  %v217_v45 = vld [vmem:[#allocation2 + $0x1f] sm:$0xff]  ;;  %p568_p0 = pneg %p567_p11  ;;  %p573_p13 = scmp.lt.s32.totalorder %s571_s7, %s565_s27 }
  0x47   : > { %v239_v15 = vld [vmem:[#allocation2 + $0x12] sm:$0xff]  ;;  %v224_v25 = vadd.f32 %v220_v22, %v216_v21  ;;  %v240_v26 = vld [vmem:[#allocation2 + $0x1a] sm:$0xff]  ;;  %v238_v39 = vld [vmem:[#allocation2 + $0xa] sm:$0xff] }
  0x48   : > { %v255_v16 = vld [vmem:[#allocation2 + $0xd] sm:$0xff]  ;;  %v243_v19 = vadd.f32 %v239_v15, %v235_v12  ;;  %v236_v23 = vld [vmem:[#allocation2 + $0x16] sm:$0xff]  ;;  %v227_v24 = vmul.f32 0.22539683, %v223_v14  ;;  %v237_v51 = vld [vmem:[#allocation2 + $0x1e] sm:$0xff]  ;;  %p574_p2 = por %p573_p13, %p572_p6 }
  0x49   : > { %v259_v17 = vld [vmem:[#allocation2 + $0x13] sm:$0xff]  ;;  %v260_v28 = vld [vmem:[#allocation2 + $0x1b] sm:$0xff]  ;;  %v244_v31 = vadd.f32 %v240_v26, %v236_v23  ;;  %v228_v36 = vmul.f32 0.22539683, %v224_v25  ;;  %v258_v44 = vld [vmem:[#allocation2 + $0xb] sm:$0xff] }
  0x4a   : > { %v263_v20 = vadd.f32 %v259_v17, %v255_v16  ;;  %v256_v27 = vld [vmem:[#allocation2 + $0x15] sm:$0xff]  ;;  %v247_v30 = vmul.f32 0.114285715, %v243_v19  ;;  %v231_v35 = vadd.f32 %v227_v24, %v197_v13  ;;  %v257_v57 = vld [vmem:[#allocation2 + $0x1d] sm:$0xff]  ;;  %p575_p5 = pnand %p574_p2, %p568_p0 }
  0x4b   : > { %v264_v32 = vadd.f32 %v260_v28, %v256_v27  ;;  %v214_v33 = vld [vmem:[#allocation2 + $0x7] sm:$0xff]  ;;  %v248_v42 = vmul.f32 0.114285715, %v244_v31  ;;  %v232_v47 = vadd.f32 %v228_v36, %v198_v18 }
  0x4c   : > { %v222_v37 = vadd.f32 %v218_v34, %v214_v33  ;;  %v234_v38 = vld [vmem:[#allocation2 + $0x6] sm:$0xff]  ;;  %v267_v41 = vmul.f32 0.04761905, %v263_v20  ;;  %v251_v46 = vadd.f32 %v247_v30, %v231_v35 }
  0x4d   : > { %v254_v40 = vld [vmem:[#allocation2 + $0x5] sm:$0xff]  ;;  %v242_v43 = vadd.f32 %v238_v39, %v234_v38  ;;  %v268_v54 = vmul.f32 0.04761905, %v264_v32  ;;  %v252_v60 = vadd.f32 %v248_v42, %v232_v47 }
  0x4e   : > { %v226_v48 = vmul.f32 0.22539683, %v222_v37  ;;  %v262_v49 = vadd.f32 %v258_v44, %v254_v40  ;;  %v221_v50 = vld [vmem:[#allocation2 + $0x21] sm:$0xff]  ;;  %v271_v59 = vadd.f32 %v267_v41, %v251_v46 }
  0x4f   : > { %v241_v52 = vld [vmem:[#allocation2 + $0x22] sm:$0xff]  ;;  %v225_v55 = vadd.f32 %v221_v50, %v217_v45  ;;  %v246_v62 = vmul.f32 0.114285715, %v242_v43  ;;  %v272_v1 = vadd.f32 %v268_v54, %v252_v60 }
  0x50   : > { %v245_v56 = vadd.f32 %v241_v52, %v237_v51  ;;  %v261_v58 = vld [vmem:[#allocation2 + $0x23] sm:$0xff]  ;;  %v230_v61 = vadd.f32 %v226_v48, %v196_v29  ;;  %283 = vst [vmem:[%s191_s21 + $0x8] sm:$0xff] %v271_v59  ;;  %v275_v2 = vsub.f32 %v828_v5, %v271_v59  ;;  %v266_v7 = vmul.f32 0.04761905, %v262_v49 }
  0x51   : > { %v229_v63 = vmul.f32 0.22539683, %v225_v55  ;;  %v265_v0 = vadd.f32 %v261_v58, %v257_v57  ;;  %284 = vst [vmem:[%s191_s21 + $0x10] sm:$0xff] %v272_v1  ;;  %v276_v11 = vsub.f32 %v830_v6, %v272_v1 }
  0x52   : > { %v250_v3 = vadd.f32 %v246_v62, %v230_v61  ;;  %v249_v10 = vmul.f32 0.114285715, %v245_v56  ;;  %279 = vst [vmem:[%s847_s4 + $0x8] sm:$0xff] %v275_v2 }
  0x53   : > { %v233_v9 = vadd.f32 %v229_v63, %v199_v53  ;;  %v269_v13 = vmul.f32 0.04761905, %v265_v0  ;;  %280 = vst [vmem:[%s847_s4 + $0x10] sm:$0xff] %v276_v11 }
  0x54   : > { %v270_v12 = vadd.f32 %v266_v7, %v250_v3 }
  0x55   : > { %v253_v5 = vadd.f32 %v249_v10, %v233_v9 }
  0x56   : > { %282 = vst [vmem:[%s191_s21] sm:$0xff] %v270_v12  ;;  %v274_v14 = vsub.f32 %v826_v4, %v270_v12 }
  0x57   : > { %v273_v15 = vadd.f32 %v269_v13, %v253_v5 }
  0x58   : > { %278 = vst [vmem:[%s847_s4] sm:$0xff] %v274_v14 }
  0x59   : > { %285 = vst [vmem:[%s191_s21 + $0x18] sm:$0xff] %v273_v15  ;;  %v277_v6 = vsub.f32 %v836_v8, %v273_v15 }
  0x5a   : > { %578 = shalt.err (!%p575_p5)
}
  0x5b   : > { %s579_s8 = scalar_lea.hbm %s860_s19, 512  ;;  %s583_s5 = scalar_lea.hbm %s951_s2, 1024 }
  0x5c   : > { %p580_p4 = scmp.ne.s32.totalorder %s860_s19, %s579_s8  ;;  %p584_p12 = scmp.lt.u32.totalorder %s860_s19, %s951_s2 }
  0x5d   : > { %p585_p1 = scmp.lt.u32.totalorder %s583_s5, %s579_s8  ;;  %p587_p8 = scmp.lt.u32.totalorder %s579_s8, %s860_s19 }
  0x5e   : > { %p581_p7 = pnand %p580_p4, %p959_p9 }
  0x5f   : > { %p586_p3 = por %p585_p1, %p584_p12 }
  0x60   : > { %p582_p10 = pneg %p581_p7 }
  0x61   : > { %p588_p11 = por %p587_p8, %p586_p3 }
  0x63   : > { %p589_p0 = pnand %p588_p11, %p582_p10 }
  0x65   : > { %592 = shalt.err (!%p589_p0)
}
  0x66   : > { %s685_s12 = smov 128   ;;  %s686_s20 = smov 8   ;;  %281 = vst [vmem:[%s847_s4 + $0x18] sm:$0xff] %v277_v6 }
  0x67   : > { %467 = dma.vmem_to_hbm [thread:$0]  (%p959_p9), %s852_s30, 512, %s860_s19, %s292_s26, %s685_s12, %s685_s12, %s686_s20  }
  0x68   : > { %s287_s27 = scalar_lea.sflag [#allocation5], %s815_s3  ;;  %s593_s28 = scalar_lea.vmem %s862_s6, 512 }
  0x69   : > { %p594_p6 = scmp.ne.s32.totalorder %s862_s6, %s593_s28  ;;  %s687_s29 = smov [#allocation6]  }
  0x6a   : > { %s597_s7 = sshll.u32 %s687_s29, 4  ;;  %s598_s7 = int_to_ptr.vmem [resolvable:$false] %s597_s7 }
  0x6b   : > { %p595_p13 = pnand %p594_p6, %p959_p9  ;;  %s599_s8 = scalar_lea.vmem %s598_s7, 1024 }
  0x6c   : > { %p600_p5 = scmp.lt.s32.totalorder %s862_s6, %s598_s7  ;;  %p601_p4 = scmp.lt.s32.totalorder %s599_s8, %s593_s28 }
  0x6d   : > { %p596_p2 = pneg %p595_p13 }
  0x6e   : > { %p602_p7 = por %p601_p4, %p600_p5 }
  0x70   : > { %p603_p10 = pnand %p602_p7, %p596_p2 }
  0x72   : > { %606 = shalt.err (!%p603_p10)
}
  0x73   : > { %s607_s30 = scalar_lea.hbm %s869_s25, 512  ;;  %s611_s26 = scalar_lea.hbm %s950_s1, 1024 }
  0x74   : > { %p608_p12 = scmp.ne.s32.totalorder %s869_s25, %s607_s30  ;;  %p612_p8 = scmp.lt.u32.totalorder %s869_s25, %s950_s1 }
  0x75   : > { %p613_p11 = scmp.lt.u32.totalorder %s611_s26, %s607_s30  ;;  %p615_p6 = scmp.lt.u32.totalorder %s607_s30, %s869_s25 }
  0x76   : > { %p609_p1 = pnand %p608_p12, %p959_p9 }
  0x77   : > { %p614_p0 = por %p613_p11, %p612_p8 }
  0x78   : > { %p610_p3 = pneg %p609_p1 }
  0x79   : > { %p616_p13 = por %p615_p6, %p614_p0 }
  0x7b   : > { %p617_p2 = pnand %p616_p13, %p610_p3 }
  0x7d   : > { %620 = shalt.err (!%p617_p2)
}
  0x7e   : > { %466 = dma.vmem_to_hbm [thread:$0]  (%p959_p9), %s862_s6, 512, %s869_s25, %s287_s27, %s685_s12, %s685_s12, %s686_s20  }
  0x7f PF: > { %s338_s5 = sand.u32 1, %s659_s9   ;;  %p960_p5 = scmp.ne.s32.totalorder %s956_s24, 0 }
  0x80   : > { %p961_p4 = scmp.ge.s32.totalorder %s679_s14, 2  ;;  %s339_s16 = scalar_lea.sflag [#allocation5], %s338_s5 }
  0x82   : > { %p475_p7 = pnand %p961_p4, %p960_p5 }
  0x84   : > { %650 = dma.done.wait (!%p475_p7), %s339_s16, 512  }
  0x85   : > { %652 = vsyncadd (!%p475_p7), %s339_s16, 4294966784  ;;  %s348_s22 = scalar_lea.sflag [#allocation8], %s338_s5 }
  0x86   : > { %654 = dma.done.wait (!%p475_p7), %s348_s22, 512  }
  0x87   : > { %656 = vsyncadd (!%p475_p7), %s348_s22, 4294966784  ;;  %s22_s14 = sadd.s32 1, %s679_s14   ;;  %s962_s9 = smov %s663_s10 }
  0x88   : > { %p19_p10 = scmp.ge.s32.totalorder %s22_s14, 4   ;;  %s963_s10 = smov %s667_s11 }
  0x89   : > { %s964_s11 = smov %s759_s23  ;;  %s965_s12 = smov %s675_s13 }
  0x8a   : > { %s966_s13 = smov %s968_s17  ;;  %21 = sbr.rel (!%p19_p10) target bundleno = 8 (0x8), region = 86 }
  0x91   :  { %353 = vsyncpa [#allocation4], 1 }
  0x92   :  { %355 = vsyncpa [#allocation4 + $0x1], 1 }
  0x93   :  { %356 = vsyncpa [#allocation5], 1 }
  0x94   :  { %358 = vsyncpa [#allocation5 + $0x1], 1 }
  0x95   :  { %359 = vsyncpa [#allocation8], 1 }
  0x96   :  { %361 = vsyncpa [#allocation8 + $0x1], 1 }

</bundles_post_ra>
